<compile_context>
chip_gen: v7x
topology: tpu7x:2x2x1
jax: 0.10.0
libtpu: 0.0.40
codegen_flags: <defaults>
</compile_context>

<pallas_src>
import jax
import jax.numpy as jnp
import numpy as np
from jax import lax
from jax.experimental import pallas as pl
from jax.experimental.pallas import tpu as pltpu


def _triples_kernel(ohi_ref, pos_ref, nj_ref, nk_ref, rij_ref, rik_ref, rjk_ref):
    # ohi_ref : (A, lt)        f32  center-atom one-hot (constant, batch independent)
    # pos_ref : (1, bb, 3, A)  f32  xyz on sublanes, atoms on lanes
    # nj_ref  : (1, bb, lt)    i32  flattened (atom, triple) neighbor indices
    # nk_ref  : (1, bb, lt)    i32
    # r*_ref  : (1, bb, lt)    f32  lane-dense distance outputs
    f32 = jnp.float32
    A = ohi_ref.shape[0]
    lt = ohi_ref.shape[1]

    pos_t = pos_ref[0]                         # (bb, 3, A)
    nj = nj_ref[0][:, None, :]                 # (bb, 1, lt)
    nk = nk_ref[0][:, None, :]                 # (bb, 1, lt)

    # Batch-independent pieces (tiny, computed once per grid step).
    oh_i = ohi_ref[...]                        # (A, lt)
    hit_val = 1.0 - oh_i                       # value where neighbor == atom row
    miss_val = -oh_i                           # value elsewhere
    atom_iota = lax.broadcasted_iota(jnp.int32, (1, A, lt), 1)

    # RHS = onehot(neighbor) - onehot(center): one compare + one select per slab.
    rhs_j = jnp.where(nj == atom_iota, hit_val, miss_val)   # (bb, A, lt)
    rhs_k = jnp.where(nk == atom_iota, hit_val, miss_val)   # (bb, A, lt)

    # MXU gathers the displacements directly; R_jk derived on the VPU (no 3rd slab).
    d_ij = jnp.einsum('bda,ban->bdn', pos_t, rhs_j, preferred_element_type=f32)
    d_ik = jnp.einsum('bda,ban->bdn', pos_t, rhs_k, preferred_element_type=f32)
    d_jk = d_ij - d_ik                                        # (bb, 3, lt)

    def _norm3(d):
        # Lane-parallel squared norm over the three xyz sublane rows (no XLU reduce).
        return jnp.sqrt(d[:, 0, :] * d[:, 0, :]
                        + d[:, 1, :] * d[:, 1, :]
                        + d[:, 2, :] * d[:, 2, :]) + 1e-9

    rij_ref[0] = _norm3(d_ij)
    rik_ref[0] = _norm3(d_ik)
    rjk_ref[0] = _norm3(d_jk)


def _vmem_capacity_bytes():
    try:
        info = pltpu.get_tpu_info()
        cap = getattr(info, "vmem_capacity_bytes", None)
        if cap:
            return int(cap)
    except Exception:
        pass
    return 64 * 1024 * 1024       # conservative fallback (v7x-sized)


def _vmem_estimate(bb, lt, A):
    # Double-buffered in/out blocks + in-kernel temporaries (rhs_j, rhs_k, disps, ...).
    io = 2 * 4 * (bb * 3 * A + 2 * bb * lt + A * lt + 3 * bb * lt)
    tmp = 4 * (3 * bb * A * lt + 12 * bb * lt)
    return io + tmp


def _plan_blocks(B, A, AT_pad, vmem_budget):
    """Pick (batch block bb, lane tile lt) under an explicit VMEM budget."""
    chunks = AT_pad // 128
    divisors = [d for d in range(1, B + 1) if B % d == 0]
    # Prefer sublane-friendly (multiple-of-8) batch blocks, then the fattest block.
    bb_cands = sorted(divisors, key=lambda d: (d % 8 != 0, -d))
    lane_cands = sorted({(chunks // n) * 128 for n in range(1, chunks + 1)
                         if chunks % n == 0}, reverse=True)
    for bb in bb_cands:
        for lt in lane_cands:
            if _vmem_estimate(bb, lt, A) <= vmem_budget:
                # v7x megacore: keep >= 2 grid steps when splitting is free.
                if (B // bb) * (AT_pad // lt) == 1:
                    if bb % 16 == 0:
                        bb //= 2
                    elif (lt // 128) % 2 == 0:
                        lt //= 2
                return bb, lt
    return 1, 128


def triples_distances(positions, neighbors_j, neighbors_k):
    """Pallas TPU implementation of TriplesDistances.forward (no PBC path)."""
    B, A, _ = positions.shape
    T = neighbors_j.shape[2]
    AT = A * T
    ATp = ((AT + 127) // 128) * 128            # lane-dense padding -> unmasked stores

    cap = _vmem_capacity_bytes()
    vmem_limit = (3 * cap) // 4                # raise scoped VMEM limit, keep headroom
    bb, lt = _plan_blocks(B, A, ATp, vmem_limit // 2)
    G, L = B // bb, ATp // lt

    f32 = jnp.float32
    pos_t = jnp.transpose(positions.astype(f32), (0, 2, 1)).reshape(G, bb, 3, A)

    def _prep_idx(n):
        n = n.astype(jnp.int32).reshape(B, AT)
        if ATp != AT:
            # TODO(synk): sentinel/padded neighbor indices (<0) are not masked; padded
            # lanes use index 0 and are sliced off after the call.
            n = jnp.pad(n, ((0, 0), (0, ATp - AT)))
        return n.reshape(G, bb, ATp)

    nj = _prep_idx(neighbors_j)
    nk = _prep_idx(neighbors_k)

    # Center-atom one-hot (lane n belongs to atom n // T): batch & grid independent,
    # built once here and streamed as a small constant input (review item #3).
    lane = jnp.arange(ATp)
    lane_owner = jnp.where(lane < AT, lane // T, -1)
    oh_i = (lane_owner[None, :] == jnp.arange(A)[:, None]).astype(f32)   # (A, ATp)

    r_ij, r_ik, r_jk = pl.pallas_call(
        _triples_kernel,
        out_shape=tuple(jax.ShapeDtypeStruct((G, bb, ATp), f32) for _ in range(3)),
        grid=(G, L),
        in_specs=[
            pl.BlockSpec((A, lt), lambda g, l: (0, l)),               # oh_i (constant)
            pl.BlockSpec((1, bb, 3, A), lambda g, l: (g, 0, 0, 0)),   # positions^T
            pl.BlockSpec((1, bb, lt), lambda g, l: (g, 0, l)),        # neighbors_j
            pl.BlockSpec((1, bb, lt), lambda g, l: (g, 0, l)),        # neighbors_k
        ],
        out_specs=tuple(pl.BlockSpec((1, bb, lt), lambda g, l: (g, 0, l))
                        for _ in range(3)),
        compiler_params=pltpu.CompilerParams(
            dimension_semantics=("parallel", "parallel"),
            vmem_limit_bytes=int(vmem_limit),
        ),
    )(oh_i, pos_t, nj, nk)

    def _finish(o):
        o = o.reshape(B, ATp)
        if ATp != AT:
            o = o[:, :AT]
        return o.reshape(B, A, T)

    return _finish(r_ij), _finish(r_ik), _finish(r_jk)


def _reference(positions, neighbors_j, neighbors_k):
    """Pure-JAX replica of the PyTorch forward for validation."""
    B = neighbors_k.shape[0]
    idx_m = jnp.arange(B)[:, None, None]
    pos_j = positions[idx_m, neighbors_j]            # (B, A, T, 3)
    pos_k = positions[idx_m, neighbors_k]            # (B, A, T, 3)
    pos_i = positions[:, :, None, :]                 # (B, A, 1, 3)
    r_ij = jnp.linalg.norm(pos_j - pos_i, axis=3) + 1e-9
    r_ik = jnp.linalg.norm(pos_k - pos_i, axis=3) + 1e-9
    r_jk = jnp.linalg.norm(pos_j - pos_k, axis=3) + 1e-9
    return r_ij, r_ik, r_jk


if __name__ == "__main__":
    # TriplesDistances has no learnable parameters (empty __init__).
    B, A, T = 2, 8, 16

    key = jax.random.PRNGKey(0)
    k_pos, k_nj, k_nk = jax.random.split(key, 3)
    positions = jax.random.normal(k_pos, (B, A, 3), dtype=jnp.float32)
    neighbors_j = jax.random.randint(k_nj, (B, A, T), 0, A, dtype=jnp.int32)
    neighbors_k = jax.random.randint(k_nk, (B, A, T), 0, A, dtype=jnp.int32)

    outs = triples_distances(positions, neighbors_j, neighbors_k)
    jax.block_until_ready(outs)

    # Validate against the pure-JAX reference of the PyTorch semantics.
    for got, want in zip(outs, _reference(positions, neighbors_j, neighbors_k)):
        np.testing.assert_allclose(np.asarray(got), np.asarray(want),
                                   rtol=1e-5, atol=1e-6)

    # Second config exercises the lane-padding path (A*T not a multiple of 128).
    T2 = 20
    nj2 = jax.random.randint(k_nj, (B, A, T2), 0, A, dtype=jnp.int32)
    nk2 = jax.random.randint(k_nk, (B, A, T2), 0, A, dtype=jnp.int32)
    outs2 = triples_distances(positions, nj2, nk2)
    jax.block_until_ready(outs2)
    for got, want in zip(outs2, _reference(positions, nj2, nk2)):
        np.testing.assert_allclose(np.asarray(got), np.asarray(want),
                                   rtol=1e-5, atol=1e-6)

    print("KERNEL_OK")
</pallas_src>

<mosaic_0001>
module attributes {stable_mosaic.version = 11 : i64} {
  func.func @_triples_kernel(%arg0: i32, %arg1: i32, %arg2: memref<8x128xf32, #tpu.memory_space<vmem>>, %arg3: memref<1x2x3x8xf32, #tpu.memory_space<vmem>>, %arg4: memref<1x2x128xi32, #tpu.memory_space<vmem>>, %arg5: memref<1x2x128xi32, #tpu.memory_space<vmem>>, %arg6: memref<1x2x128xf32, #tpu.memory_space<vmem>>, %arg7: memref<1x2x128xf32, #tpu.memory_space<vmem>>, %arg8: memref<1x2x128xf32, #tpu.memory_space<vmem>>) attributes {dimension_semantics = [#tpu.dimension_semantics<parallel>, #tpu.dimension_semantics<parallel>], iteration_bounds = array<i64: 1, 1>, scalar_prefetch = 0 : i64, scratch_operands = 0 : i64, tpu.core_type = #tpu.core_type<tc>, window_params = [{transform_indices = @transform_0, window_bounds = array<i64: 8, 128>}, {transform_indices = @transform_1, window_bounds = array<i64: 1, 2, 3, 8>}, {transform_indices = @transform_2, window_bounds = array<i64: 1, 2, 128>}, {transform_indices = @transform_3, window_bounds = array<i64: 1, 2, 128>}, {transform_indices = @transform_4, window_bounds = array<i64: 1, 2, 128>}, {transform_indices = @transform_5, window_bounds = array<i64: 1, 2, 128>}, {transform_indices = @transform_6, window_bounds = array<i64: 1, 2, 128>}]} {
    %c0 = arith.constant 0 : index
    %c0_0 = arith.constant 0 : index
    %c0_1 = arith.constant 0 : index
    %c0_2 = arith.constant 0 : index
    %0 = vector.load %arg3[%c0, %c0_0, %c0_1, %c0_2] : memref<1x2x3x8xf32, #tpu.memory_space<vmem>>, vector<1x2x3x8xf32>
    %1 = vector.shape_cast %0 : vector<1x2x3x8xf32> to vector<2x3x8xf32>
    %c0_3 = arith.constant 0 : index
    %c0_4 = arith.constant 0 : index
    %c0_5 = arith.constant 0 : index
    %2 = vector.load %arg4[%c0_3, %c0_4, %c0_5] : memref<1x2x128xi32, #tpu.memory_space<vmem>>, vector<1x2x128xi32>
    %3 = vector.shape_cast %2 : vector<1x2x128xi32> to vector<2x128xi32>
    %4 = vector.shape_cast %3 : vector<2x128xi32> to vector<2x1x128xi32>
    %c0_6 = arith.constant 0 : index
    %c0_7 = arith.constant 0 : index
    %c0_8 = arith.constant 0 : index
    %5 = vector.load %arg5[%c0_6, %c0_7, %c0_8] : memref<1x2x128xi32, #tpu.memory_space<vmem>>, vector<1x2x128xi32>
    %6 = vector.shape_cast %5 : vector<1x2x128xi32> to vector<2x128xi32>
    %7 = vector.shape_cast %6 : vector<2x128xi32> to vector<2x1x128xi32>
    %c0_9 = arith.constant 0 : index
    %c0_10 = arith.constant 0 : index
    %8 = vector.load %arg2[%c0_9, %c0_10] : memref<8x128xf32, #tpu.memory_space<vmem>>, vector<8x128xf32>
    %cst = arith.constant 1.000000e+00 : f32
    %9 = vector.broadcast %cst : f32 to vector<8x128xf32>
    %10 = arith.subf %9, %8 : vector<8x128xf32>
    %cst_11 = arith.constant 0.000000e+00 : f32
    %11 = vector.broadcast %cst_11 : f32 to vector<8x128xf32>
    %12 = arith.subf %11, %8 : vector<8x128xf32>
    %13 = tpu.iota {dimensions = array<i32: 1>} : vector<1x8x128xi32>
    %14 = vector.broadcast %4 : vector<2x1x128xi32> to vector<2x8x128xi32>
    %15 = vector.broadcast %13 : vector<1x8x128xi32> to vector<2x8x128xi32>
    %16 = arith.cmpi eq, %14, %15 : vector<2x8x128xi32>
    %17 = vector.shape_cast %10 : vector<8x128xf32> to vector<1x8x128xf32>
    %18 = vector.broadcast %17 : vector<1x8x128xf32> to vector<2x8x128xf32>
    %19 = vector.shape_cast %12 : vector<8x128xf32> to vector<1x8x128xf32>
    %20 = vector.broadcast %19 : vector<1x8x128xf32> to vector<2x8x128xf32>
    %21 = arith.select %16, %18, %20 : vector<2x8x128xi1>, vector<2x8x128xf32>
    %22 = vector.broadcast %7 : vector<2x1x128xi32> to vector<2x8x128xi32>
    %23 = vector.broadcast %13 : vector<1x8x128xi32> to vector<2x8x128xi32>
    %24 = arith.cmpi eq, %22, %23 : vector<2x8x128xi32>
    %25 = vector.shape_cast %10 : vector<8x128xf32> to vector<1x8x128xf32>
    %26 = vector.broadcast %25 : vector<1x8x128xf32> to vector<2x8x128xf32>
    %27 = vector.shape_cast %12 : vector<8x128xf32> to vector<1x8x128xf32>
    %28 = vector.broadcast %27 : vector<1x8x128xf32> to vector<2x8x128xf32>
    %29 = arith.select %24, %26, %28 : vector<2x8x128xi1>, vector<2x8x128xf32>
    "tpu.trace_start"() <{level = 10 : i32, message = "bda,ban->bdn"}> : () -> ()
    %cst_12 = arith.constant dense<0.000000e+00> : vector<2x3x128xf32>
    %30 = tpu.matmul %1, %21, %cst_12 {dimension_numbers = #tpu.dot_dimension_numbers<[2], [1], [1], [2], [0, 0, 0, 1, 1, 2], [0], [0]>} : vector<2x3x8xf32>, vector<2x8x128xf32>, vector<2x3x128xf32> -> vector<2x3x128xf32>
    %cst_13 = arith.constant dense<0.000000e+00> : vector<2x3x128xf32>
    %31 = tpu.matmul %1, %29, %cst_13 {dimension_numbers = #tpu.dot_dimension_numbers<[2], [1], [1], [2], [0, 0, 0, 1, 1, 2], [0], [0]>} : vector<2x3x8xf32>, vector<2x8x128xf32>, vector<2x3x128xf32> -> vector<2x3x128xf32>
    "tpu.trace_stop"() : () -> ()
    %32 = arith.subf %30, %31 : vector<2x3x128xf32>
    %33 = vector.extract_strided_slice %30 {offsets = [0, 0, 0], sizes = [2, 1, 128], strides = [1, 1, 1]} : vector<2x3x128xf32> to vector<2x1x128xf32>
    %34 = vector.shape_cast %33 : vector<2x1x128xf32> to vector<2x128xf32>
    %35 = vector.extract_strided_slice %30 {offsets = [0, 0, 0], sizes = [2, 1, 128], strides = [1, 1, 1]} : vector<2x3x128xf32> to vector<2x1x128xf32>
    %36 = vector.shape_cast %35 : vector<2x1x128xf32> to vector<2x128xf32>
    %37 = arith.mulf %34, %36 : vector<2x128xf32>
    %38 = vector.extract_strided_slice %30 {offsets = [0, 1, 0], sizes = [2, 1, 128], strides = [1, 1, 1]} : vector<2x3x128xf32> to vector<2x1x128xf32>
    %39 = vector.shape_cast %38 : vector<2x1x128xf32> to vector<2x128xf32>
    %40 = vector.extract_strided_slice %30 {offsets = [0, 1, 0], sizes = [2, 1, 128], strides = [1, 1, 1]} : vector<2x3x128xf32> to vector<2x1x128xf32>
    %41 = vector.shape_cast %40 : vector<2x1x128xf32> to vector<2x128xf32>
    %42 = arith.mulf %39, %41 : vector<2x128xf32>
    %43 = arith.addf %37, %42 : vector<2x128xf32>
    %44 = vector.extract_strided_slice %30 {offsets = [0, 2, 0], sizes = [2, 1, 128], strides = [1, 1, 1]} : vector<2x3x128xf32> to vector<2x1x128xf32>
    %45 = vector.shape_cast %44 : vector<2x1x128xf32> to vector<2x128xf32>
    %46 = vector.extract_strided_slice %30 {offsets = [0, 2, 0], sizes = [2, 1, 128], strides = [1, 1, 1]} : vector<2x3x128xf32> to vector<2x1x128xf32>
    %47 = vector.shape_cast %46 : vector<2x1x128xf32> to vector<2x128xf32>
    %48 = arith.mulf %45, %47 : vector<2x128xf32>
    %49 = arith.addf %43, %48 : vector<2x128xf32>
    %50 = math.sqrt %49 : vector<2x128xf32>
    %cst_14 = arith.constant 9.99999971E-10 : f32
    %51 = vector.broadcast %cst_14 : f32 to vector<2x128xf32>
    %52 = arith.addf %50, %51 : vector<2x128xf32>
    %c0_15 = arith.constant 0 : index
    %c0_16 = arith.constant 0 : index
    %c0_17 = arith.constant 0 : index
    %53 = vector.load %arg6[%c0_15, %c0_16, %c0_17] : memref<1x2x128xf32, #tpu.memory_space<vmem>>, vector<1x2x128xf32>
    %54 = vector.shape_cast %53 : vector<1x2x128xf32> to vector<2x128xf32>
    %55 = vector.shape_cast %52 : vector<2x128xf32> to vector<1x2x128xf32>
    tpu.vector_store %arg6[%c0_15, %c0_16, %c0_17], %55 {strides = array<i32>} : memref<1x2x128xf32, #tpu.memory_space<vmem>>, vector<1x2x128xf32>,
    %56 = vector.extract_strided_slice %31 {offsets = [0, 0, 0], sizes = [2, 1, 128], strides = [1, 1, 1]} : vector<2x3x128xf32> to vector<2x1x128xf32>
    %57 = vector.shape_cast %56 : vector<2x1x128xf32> to vector<2x128xf32>
    %58 = vector.extract_strided_slice %31 {offsets = [0, 0, 0], sizes = [2, 1, 128], strides = [1, 1, 1]} : vector<2x3x128xf32> to vector<2x1x128xf32>
    %59 = vector.shape_cast %58 : vector<2x1x128xf32> to vector<2x128xf32>
    %60 = arith.mulf %57, %59 : vector<2x128xf32>
    %61 = vector.extract_strided_slice %31 {offsets = [0, 1, 0], sizes = [2, 1, 128], strides = [1, 1, 1]} : vector<2x3x128xf32> to vector<2x1x128xf32>
    %62 = vector.shape_cast %61 : vector<2x1x128xf32> to vector<2x128xf32>
    %63 = vector.extract_strided_slice %31 {offsets = [0, 1, 0], sizes = [2, 1, 128], strides = [1, 1, 1]} : vector<2x3x128xf32> to vector<2x1x128xf32>
    %64 = vector.shape_cast %63 : vector<2x1x128xf32> to vector<2x128xf32>
    %65 = arith.mulf %62, %64 : vector<2x128xf32>
    %66 = arith.addf %60, %65 : vector<2x128xf32>
    %67 = vector.extract_strided_slice %31 {offsets = [0, 2, 0], sizes = [2, 1, 128], strides = [1, 1, 1]} : vector<2x3x128xf32> to vector<2x1x128xf32>
    %68 = vector.shape_cast %67 : vector<2x1x128xf32> to vector<2x128xf32>
    %69 = vector.extract_strided_slice %31 {offsets = [0, 2, 0], sizes = [2, 1, 128], strides = [1, 1, 1]} : vector<2x3x128xf32> to vector<2x1x128xf32>
    %70 = vector.shape_cast %69 : vector<2x1x128xf32> to vector<2x128xf32>
    %71 = arith.mulf %68, %70 : vector<2x128xf32>
    %72 = arith.addf %66, %71 : vector<2x128xf32>
    %73 = math.sqrt %72 : vector<2x128xf32>
    %cst_18 = arith.constant 9.99999971E-10 : f32
    %74 = vector.broadcast %cst_18 : f32 to vector<2x128xf32>
    %75 = arith.addf %73, %74 : vector<2x128xf32>
    %c0_19 = arith.constant 0 : index
    %c0_20 = arith.constant 0 : index
    %c0_21 = arith.constant 0 : index
    %76 = vector.load %arg7[%c0_19, %c0_20, %c0_21] : memref<1x2x128xf32, #tpu.memory_space<vmem>>, vector<1x2x128xf32>
    %77 = vector.shape_cast %76 : vector<1x2x128xf32> to vector<2x128xf32>
    %78 = vector.shape_cast %75 : vector<2x128xf32> to vector<1x2x128xf32>
    tpu.vector_store %arg7[%c0_19, %c0_20, %c0_21], %78 {strides = array<i32>} : memref<1x2x128xf32, #tpu.memory_space<vmem>>, vector<1x2x128xf32>,
    %79 = vector.extract_strided_slice %32 {offsets = [0, 0, 0], sizes = [2, 1, 128], strides = [1, 1, 1]} : vector<2x3x128xf32> to vector<2x1x128xf32>
    %80 = vector.shape_cast %79 : vector<2x1x128xf32> to vector<2x128xf32>
    %81 = vector.extract_strided_slice %32 {offsets = [0, 0, 0], sizes = [2, 1, 128], strides = [1, 1, 1]} : vector<2x3x128xf32> to vector<2x1x128xf32>
    %82 = vector.shape_cast %81 : vector<2x1x128xf32> to vector<2x128xf32>
    %83 = arith.mulf %80, %82 : vector<2x128xf32>
    %84 = vector.extract_strided_slice %32 {offsets = [0, 1, 0], sizes = [2, 1, 128], strides = [1, 1, 1]} : vector<2x3x128xf32> to vector<2x1x128xf32>
    %85 = vector.shape_cast %84 : vector<2x1x128xf32> to vector<2x128xf32>
    %86 = vector.extract_strided_slice %32 {offsets = [0, 1, 0], sizes = [2, 1, 128], strides = [1, 1, 1]} : vector<2x3x128xf32> to vector<2x1x128xf32>
    %87 = vector.shape_cast %86 : vector<2x1x128xf32> to vector<2x128xf32>
    %88 = arith.mulf %85, %87 : vector<2x128xf32>
    %89 = arith.addf %83, %88 : vector<2x128xf32>
    %90 = vector.extract_strided_slice %32 {offsets = [0, 2, 0], sizes = [2, 1, 128], strides = [1, 1, 1]} : vector<2x3x128xf32> to vector<2x1x128xf32>
    %91 = vector.shape_cast %90 : vector<2x1x128xf32> to vector<2x128xf32>
    %92 = vector.extract_strided_slice %32 {offsets = [0, 2, 0], sizes = [2, 1, 128], strides = [1, 1, 1]} : vector<2x3x128xf32> to vector<2x1x128xf32>
    %93 = vector.shape_cast %92 : vector<2x1x128xf32> to vector<2x128xf32>
    %94 = arith.mulf %91, %93 : vector<2x128xf32>
    %95 = arith.addf %89, %94 : vector<2x128xf32>
    %96 = math.sqrt %95 : vector<2x128xf32>
    %cst_22 = arith.constant 9.99999971E-10 : f32
    %97 = vector.broadcast %cst_22 : f32 to vector<2x128xf32>
    %98 = arith.addf %96, %97 : vector<2x128xf32>
    %c0_23 = arith.constant 0 : index
    %c0_24 = arith.constant 0 : index
    %c0_25 = arith.constant 0 : index
    %99 = vector.load %arg8[%c0_23, %c0_24, %c0_25] : memref<1x2x128xf32, #tpu.memory_space<vmem>>, vector<1x2x128xf32>
    %100 = vector.shape_cast %99 : vector<1x2x128xf32> to vector<2x128xf32>
    %101 = vector.shape_cast %98 : vector<2x128xf32> to vector<1x2x128xf32>
    tpu.vector_store %arg8[%c0_23, %c0_24, %c0_25], %101 {strides = array<i32>} : memref<1x2x128xf32, #tpu.memory_space<vmem>>, vector<1x2x128xf32>,
    return
  }
  func.func @transform_0(%arg0: i32, %arg1: i32) -> (i32, i32) {
    %c0_i32 = arith.constant 0 : i32
    %c0_i32_0 = arith.constant 0 : i32
    return %c0_i32, %arg1 : i32, i32
  }
  func.func @transform_1(%arg0: i32, %arg1: i32) -> (i32, i32, i32, i32) {
    %c0_i32 = arith.constant 0 : i32
    %c0_i32_0 = arith.constant 0 : i32
    %c0_i32_1 = arith.constant 0 : i32
    %c0_i32_2 = arith.constant 0 : i32
    return %arg0, %c0_i32, %c0_i32_0, %c0_i32_1 : i32, i32, i32, i32
  }
  func.func @transform_2(%arg0: i32, %arg1: i32) -> (i32, i32, i32) {
    %c0_i32 = arith.constant 0 : i32
    %c0_i32_0 = arith.constant 0 : i32
    return %arg0, %c0_i32, %arg1 : i32, i32, i32
  }
  func.func @transform_3(%arg0: i32, %arg1: i32) -> (i32, i32, i32) {
    %c0_i32 = arith.constant 0 : i32
    %c0_i32_0 = arith.constant 0 : i32
    return %arg0, %c0_i32, %arg1 : i32, i32, i32
  }
  func.func @transform_4(%arg0: i32, %arg1: i32) -> (i32, i32, i32) {
    %c0_i32 = arith.constant 0 : i32
    %c0_i32_0 = arith.constant 0 : i32
    return %arg0, %c0_i32, %arg1 : i32, i32, i32
  }
  func.func @transform_5(%arg0: i32, %arg1: i32) -> (i32, i32, i32) {
    %c0_i32 = arith.constant 0 : i32
    %c0_i32_0 = arith.constant 0 : i32
    return %arg0, %c0_i32, %arg1 : i32, i32, i32
  }
  func.func @transform_6(%arg0: i32, %arg1: i32) -> (i32, i32, i32) {
    %c0_i32 = arith.constant 0 : i32
    %c0_i32_0 = arith.constant 0 : i32
    return %arg0, %c0_i32, %arg1 : i32, i32, i32
  }
}

</mosaic_0001>

<bundles_post_ra>
// kernel: tpu_custom_call.1
= control target key start
LH: loop header
LB: loop body
LE: loop exit
PB: predicated region body
PF: predicated region fallthrough
CT: control target
= control target key end

     0   :  { %12 = vsyncpa [#allocation3], 0  ;;  %v36_v1 = vlaneseq  ;;  %v666_v2 = vmov 0.0   ;;  %v667_v3 = vmov 1966171168   ;;  %vm668_vm0 = vmmov 0   ;;  %s777_s0 = inlined_call_operand.vmem [shape: f32[8,128], index: 0, kind: input, shape index: {}]   ;;  %s778_s1 = inlined_call_operand.vmem [shape: f32[1,2,3,8], index: 1, kind: input, shape index: {}]   ;;  %s779_s2 = inlined_call_operand.vmem [shape: s32[1,2,128], index: 2, kind: input, shape index: {}]   ;;  %s780_s3 = inlined_call_operand.vmem [shape: s32[1,2,128], index: 3, kind: input, shape index: {}]   ;;  %s781_s4 = inlined_call_operand.hbm [shape: f32[1,2,128], index: 4, kind: output, shape index: {0}]   ;;  %s782_s5 = inlined_call_operand.hbm [shape: f32[1,2,128], index: 5, kind: output, shape index: {1}]   ;;  %s783_s6 = inlined_call_operand.hbm [shape: f32[1,2,128], index: 6, kind: output, shape index: {2}]  }
   0x1   :  { %v544_v0 = vld.sshfl [vmem:[%s779_s2] sm:$0x11 pattern:$0x75316420]  ;;  %558 = vmatprep.subr.mxu0 %v666_v2  ;;  %563 = vmatprep.subr.mxu1 %v666_v2  ;;  %v34_v4 = vunpack.c.l.s4 %v667_v3 }
   0x2   :  { %v37_v5 = vshrl.u32 %v36_v1, 7  ;;  %560 = vmatprep.mubr.msk.f32.mxu0 %vm668_vm0, %v666_v2  ;;  %565 = vmatprep.mubr.msk.f32.mxu1 %vm668_vm0, %v666_v2  ;;  %v545_v6 = vld.sshfl [vmem:[%s780_s3] sm:$0x11 pattern:$0x75316420] }
   0x3   :  { %13 = vsyncpa [#allocation5], 0  ;;  %v35_v7 = vunpack.c.0.s8 %v34_v4  ;;  %v32_v8 = vcombine.high %v544_v0, %v544_v0  ;;  %v55_v9 = vcombine.high %v545_v6, %v545_v6  ;;  %v70_v11 = vld [vmem:[%s777_s0] sm:$0xff]  ;;  %vm99_vm1 = vcmask 64512   ;;  %s670_s29 = smov [#allocation4]   ;;  %s671_s7 = smov [#allocation6]  }
   0x4   :  { %v77_v12 = vsub.s32 0, %v37_v5  ;;  %v71_v17 = vsub.f32 1.0, %v70_v11  ;;  %v72_v18 = vsub.f32 0.0, %v70_v11  ;;  %v22_v23 = vld [vmem:[%s778_s1] sm:$0x7]  ;;  %vm423_vm6 = vcmask 1041409  }
   0x5   :  { %v38_v10 = vsub.s32 %v35_v7, %v37_v5  ;;  %v23_v24 = vld [vmem:[%s778_s1 + $0x4] sm:$0x7]  ;;  %s669_s1 = smov [#allocation2]   ;;  %s519_s30 = sshll.u32 %s670_s29, 4  ;;  %s732_s30 = int_to_ptr.vmem [resolvable:$true] %s519_s30 }
   0x6   :  { %s509_s28 = sshll.u32 %s669_s1, 4  ;;  %s529_s8 = sshll.u32 %s671_s7, 4  ;;  %s510_s28 = int_to_ptr.vmem [resolvable:$true] %s509_s28  ;;  %s530_s8 = int_to_ptr.vmem [resolvable:$true] %s529_s8 }
   0x7   :  { %v39_v13 = vrot.slane %v544_v0, %v38_v10  ;;  %v46_v14 = vrot.slane %v32_v8, %v38_v10  ;;  %v69_v15 = vrot.slane %v55_v9, %v38_v10  ;;  %v62_v16 = vrot.slane %v545_v6, %v38_v10  ;;  %s596_s9 = scalar_lea.vmem %s510_s28, 32  ;;  %p601_p1 = scmp.lt.s32.totalorder %s510_s28, %s510_s28 }
   0x8   :  { %p597_p0 = scmp.ne.s32.totalorder %s510_s28, %s596_s9  ;;  %p602_p2 = scmp.lt.s32.totalorder %s596_s9, %s596_s9 }
   0x9   :  { %v78_v19 = vrot.slane %v39_v13, %v77_v12  ;;  %v82_v20 = vrot.slane %v46_v14, %v77_v12  ;;  %v94_v21 = vrot.slane %v69_v15, %v77_v12  ;;  %v90_v22 = vrot.slane %v62_v16, %v77_v12 }
   0xa   :  { %p603_p3 = por %p602_p2, %p601_p1 }
   0xb   :  { %vm83_vm2 = vcmp.eq.s32.totalorder %v78_v19, %v37_v5  ;;  %vm84_vm3 = vcmp.eq.s32.totalorder %v82_v20, %v37_v5  ;;  %vm96_vm4 = vcmp.eq.s32.totalorder %v94_v21, %v37_v5  ;;  %vm95_vm5 = vcmp.eq.s32.totalorder %v90_v22, %v37_v5 }
   0xc   :  { %v85_v25 = vsel %vm83_vm2, %v71_v17, %v72_v18  ;;  %v86_v26 = vsel %vm84_vm3, %v71_v17, %v72_v18  ;;  %v98_v27 = vsel %vm96_vm4, %v71_v17, %v72_v18  ;;  %v97_v28 = vsel %vm95_vm5, %v71_v17, %v72_v18  ;;  %p604_p4 = pnand %p603_p3, %p597_p0 }
   0xd   :  { %559 = vmatpush3.msra.mxu0 %v85_v25  ;;  %564 = vmatpush3.msra.mxu1 %v86_v26 }
   0xe   :  { %561 = vmatmul.mubr.msk.f32.vlgmr.msra.gmra.mrb[0].mxu0 %vm99_vm1, %v22_v23  ;;  %566 = vmatmul.mubr.msk.f32.vlgmr.msra.gmra.mrb[0].mxu1 %vm99_vm1, %v23_v24 }
   0xf   :  { %573 = vmatprep.subr.mxu1 %v666_v2  ;;  %568 = vmatprep.subr.mxu0 %v666_v2 }
  0x10   :  { %574 = vmatpush3.msra.mxu1 %v98_v27  ;;  %569 = vmatpush3.msra.mxu0 %v97_v28 }
  0x11   :  { %570 = vmatprep.mubr.msk.f32.mxu0 %vm668_vm0, %v666_v2  ;;  %575 = vmatprep.mubr.msk.f32.mxu1 %vm668_vm0, %v666_v2 }
  0x12   :  { %571 = vmatmul.mubr.msk.f32.vlgmr.msra.gmra.mrb[2].mxu0 %vm99_vm1, %v22_v23  ;;  %576 = vmatmul.mubr.msk.f32.vlgmr.msra.gmra.mrb[2].mxu1 %vm99_vm1, %v23_v24 }
  0xe1   :  { %v169_v29 = vpop.f32.mrb[0].mxu0  ;;  %v242_v30 = vpop.f32.mrb[0].mxu1 }
  0xe2   :  { %v388_v31 = vmul.f32 %v169_v29, %v169_v29  ;;  %v389_v32 = vmul.f32 %v242_v30, %v242_v30  ;;  %v567_v33 = vpop.f32.mrb[1].mxu1  ;;  %v562_v34 = vpop.f32.mrb[1].mxu0 }
  0xe4   :  { %v392_v35 = vrot.slane %v388_v31, 1  ;;  %v398_v36 = vrot.slane %v388_v31, 2  ;;  %v393_v37 = vrot.slane %v389_v32, 1  ;;  %v399_v38 = vrot.slane %v389_v32, 2 }
  0xe5   :  { %v312_v39 = vpop.f32.mrb[2].mxu0  ;;  %v382_v40 = vpop.f32.mrb[2].mxu1 }
  0xe6   :  { %v396_v41 = vadd.f32 %v392_v35, %v388_v31  ;;  %v397_v42 = vadd.f32 %v393_v37, %v389_v32  ;;  %v386_v43 = vsub.f32 %v169_v29, %v312_v39  ;;  %v427_v44 = vmul.f32 %v312_v39, %v312_v39  ;;  %v577_v45 = vpop.f32.mrb[3].mxu1  ;;  %v572_v46 = vpop.f32.mrb[3].mxu0 }
  0xe7   :  { %v387_v47 = vsub.f32 %v242_v30, %v382_v40  ;;  %v428_v48 = vmul.f32 %v382_v40, %v382_v40 }
  0xe8   :  { %v402_v49 = vadd.f32 %v398_v36, %v396_v41  ;;  %v403_v50 = vadd.f32 %v399_v38, %v397_v42  ;;  %v431_v51 = vrot.slane %v427_v44, 1  ;;  %v437_v52 = vrot.slane %v427_v44, 2 }
  0xe9   :  { %v465_v53 = vmul.f32 %v386_v43, %v386_v43  ;;  %v432_v54 = vrot.slane %v428_v48, 1  ;;  %v466_v55 = vmul.f32 %v387_v47, %v387_v47  ;;  %v438_v59 = vrot.slane %v428_v48, 2 }
  0xea   :  { %v435_v56 = vadd.f32 %v431_v51, %v427_v44  ;;  %584 = vrsqrt.f32 %v402_v49  ;;  %vm406_vm7 = vcmp.eq.f32.partialorder %v402_v49, inf  ;;  %vm408_vm8 = vcmp.eq.f32.partialorder %v402_v49, 0.0 }
  0xeb   :  { %v469_v57 = vrot.slane %v465_v53, 1  ;;  %v436_v58 = vadd.f32 %v432_v54, %v428_v48  ;;  %v470_v60 = vrot.slane %v466_v55, 1  ;;  %v475_v62 = vrot.slane %v465_v53, 2 }
  0xec   :  { %v441_v61 = vadd.f32 %v437_v52, %v435_v56  ;;  %586 = vrsqrt.f32 %v403_v50  ;;  %v476_v2 = vrot.slane %v466_v55, 2  ;;  %v409_v9 = vand.u32 2147483648, %v402_v49 }
  0xed   :  { %v473_v63 = vadd.f32 %v469_v57, %v465_v53  ;;  %v442_v0 = vadd.f32 %v438_v59, %v436_v58  ;;  %v474_v1 = vadd.f32 %v470_v60, %v466_v55  ;;  %vm413_vm9 = vcmp.eq.f32.partialorder %v403_v50, inf }
  0xee   :  { %588 = vrsqrt.f32 %v441_v61  ;;  %vm445_vm10 = vcmp.eq.f32.partialorder %v441_v61, inf  ;;  %vm447_vm11 = vcmp.eq.f32.partialorder %v441_v61, 0.0  ;;  %v448_v12 = vand.u32 2147483648, %v441_v61 }
  0xef   :  { %v479_v3 = vadd.f32 %v475_v62, %v473_v63  ;;  %v480_v4 = vadd.f32 %v476_v2, %v474_v1  ;;  %590 = vrsqrt.f32 %v442_v0  ;;  %v416_v13 = vand.u32 2147483648, %v403_v50 }
  0xf0   :  { %vm415_vm12 = vcmp.eq.f32.partialorder %v403_v50, 0.0  ;;  %vm452_vm13 = vcmp.eq.f32.partialorder %v442_v0, inf  ;;  %vm454_vm14 = vcmp.eq.f32.partialorder %v442_v0, 0.0  ;;  %v455_v22 = vand.u32 2147483648, %v442_v0 }
  0xf1   :  { %592 = vrsqrt.f32 %v479_v3  ;;  %vm483_vm15 = vcmp.eq.f32.partialorder %v479_v3, inf  ;;  %v486_v28 = vand.u32 2147483648, %v479_v3  ;;  %vm490_vm0 = vcmp.eq.f32.partialorder %v480_v4, inf }
  0xf2   :  { %594 = vrsqrt.f32 %v480_v4  ;;  %v493_v35 = vand.u32 2147483648, %v480_v4  ;;  %vm485_vm1 = vcmp.eq.f32.partialorder %v479_v3, 0.0  ;;  %vm492_vm2 = vcmp.eq.f32.partialorder %v480_v4, 0.0 }
  0xf4   :  { %v585_v5 = vpop.eup %584 }
  0xf5   :  { %v405_v6 = vmul.f32 %v585_v5, %v402_v49 }
  0xf6   :  { %v587_v7 = vpop.eup %586 }
  0xf7   :  { %v407_v8 = vsel %vm406_vm7, %v402_v49, %v405_v6  ;;  %v412_v10 = vmul.f32 %v587_v7, %v403_v50 }
  0xf8   :  { %v589_v11 = vpop.eup %588  ;;  %v410_v16 = vsel %vm408_vm8, %v409_v9, %v407_v8 }
  0xf9   :  { %v591_v14 = vpop.eup %590  ;;  %v444_v15 = vmul.f32 %v589_v11, %v441_v61  ;;  %v414_v17 = vsel %vm413_vm9, %v403_v50, %v412_v10  ;;  %v418_v26 = vadd.f32 1e-09, %v410_v16 }
  0xfa   :  { %v451_v18 = vmul.f32 %v591_v14, %v442_v0  ;;  %v417_v19 = vsel %vm415_vm12, %v416_v13, %v414_v17 }
  0xfb   :  { %v593_v20 = vpop.eup %592  ;;  %v446_v21 = vsel %vm445_vm10, %v441_v61, %v444_v15  ;;  %v419_v23 = vadd.f32 1e-09, %v417_v19 }
  0xfc   :  { %v595_v24 = vpop.eup %594  ;;  %v453_v25 = vsel %vm452_vm13, %v442_v0, %v451_v18  ;;  %v482_v27 = vmul.f32 %v593_v20, %v479_v3  ;;  %v449_v29 = vsel %vm447_vm11, %v448_v12, %v446_v21 }
  0xfd   :  { %v456_v30 = vsel %vm454_vm14, %v455_v22, %v453_v25  ;;  %v422_v31 = vrot.slane %v419_v23, 7  ;;  %v489_v32 = vmul.f32 %v595_v24, %v480_v4  ;;  %v457_v38 = vadd.f32 1e-09, %v449_v29 }
  0xfe   :  { %v458_v33 = vadd.f32 1e-09, %v456_v30  ;;  %v484_v34 = vsel %vm483_vm15, %v479_v3, %v482_v27 }
  0xff   :  { %v424_v36 = vsel %vm423_vm6, %v422_v31, %v418_v26  ;;  %v491_v37 = vsel %vm490_vm0, %v480_v4, %v489_v32  ;;  %v487_v40 = vsel %vm485_vm1, %v486_v28, %v484_v34 }
 0x100   :  { %v461_v39 = vrot.slane %v458_v33, 7  ;;  %426 = vst [vmem:[#allocation2] sm:$0x3] %v424_v36  ;;  %v494_v41 = vsel %vm492_vm2, %v493_v35, %v491_v37 }
 0x101   :  { %607 = shalt.err (!%p604_p4)
}
 0x102   :  { %s608_s12 = scalar_lea.hbm %s781_s4, 32 }
 0x103   :  { %p609_p5 = scmp.ne.s32.totalorder %s781_s4, %s608_s12  ;;  %p612_p6 = scmp.lt.u32.totalorder %s608_s12, %s781_s4 }
 0x105   :  { %p614_p7 = pnand %p612_p6, %p609_p5 }
 0x107   :  { %617 = shalt.err (!%p614_p7)
}
 0x108   :  { %512 = dma.vmem_to_hbm [thread:$0]  %s510_s28, 32, %s781_s4, [#allocation3]   ;;  %v496_v42 = vadd.f32 1e-09, %v494_v41  ;;  %v462_v43 = vsel %vm423_vm6, %v461_v39, %v457_v38  ;;  %v495_v44 = vadd.f32 1e-09, %v487_v40 }
 0x109   :  { %464 = vst [vmem:[#allocation4] sm:$0x3] %v462_v43  ;;  %s618_s19 = scalar_lea.vmem %s732_s30, 32  ;;  %p623_p9 = scmp.lt.s32.totalorder %s732_s30, %s732_s30 }
 0x10a   :  { %v499_v45 = vrot.slane %v496_v42, 7  ;;  %p619_p8 = scmp.ne.s32.totalorder %s732_s30, %s618_s19  ;;  %p624_p10 = scmp.lt.s32.totalorder %s618_s19, %s618_s19 }
 0x10c   :  { %p625_p11 = por %p624_p10, %p623_p9 }
 0x10e   :  { %p626_p12 = pnand %p625_p11, %p619_p8 }
 0x110   :  { %629 = shalt.err (!%p626_p12)
}
 0x111   :  { %s630_s22 = scalar_lea.hbm %s782_s5, 32 }
 0x112   :  { %p631_p13 = scmp.ne.s32.totalorder %s782_s5, %s630_s22  ;;  %p634_p0 = scmp.lt.u32.totalorder %s630_s22, %s782_s5 }
 0x114   :  { %p636_p1 = pnand %p634_p0, %p631_p13 }
 0x116   :  { %639 = shalt.err (!%p636_p1)
}
 0x117   :  { %522 = dma.vmem_to_hbm [thread:$0]  %s732_s30, 32, %s782_s5, [#allocation5]   ;;  %v500_v46 = vsel %vm423_vm6, %v499_v45, %v495_v44 }
 0x118   :  { %502 = vst [vmem:[#allocation6] sm:$0x3] %v500_v46  ;;  %s640_s26 = scalar_lea.vmem %s530_s8, 32  ;;  %p645_p3 = scmp.lt.s32.totalorder %s530_s8, %s530_s8 }
 0x119   :  { %p641_p2 = scmp.ne.s32.totalorder %s530_s8, %s640_s26  ;;  %p646_p4 = scmp.lt.s32.totalorder %s640_s26, %s640_s26 }
 0x11b   :  { %p647_p5 = por %p646_p4, %p645_p3 }
 0x11d   :  { %p648_p6 = pnand %p647_p5, %p641_p2 }
 0x11f   :  { %651 = shalt.err (!%p648_p6)
}
 0x120   :  { %s652_s1 = scalar_lea.hbm %s783_s6, 32 }
 0x121   :  { %p653_p7 = scmp.ne.s32.totalorder %s783_s6, %s652_s1  ;;  %p656_p8 = scmp.lt.u32.totalorder %s652_s1, %s783_s6 }
 0x123   :  { %p658_p9 = pnand %p656_p8, %p653_p7 }
 0x125   :  { %661 = shalt.err (!%p658_p9)
}
 0x126   :  { %532 = dma.vmem_to_hbm [thread:$0]  %s530_s8, 32, %s783_s6, [#allocation5]  }
 0x127   :  { %662 = dma.done.wait [#allocation3], 32  }
 0x128   :  { %663 = vsyncadd [#allocation3], 4294967264 }
 0x129   :  { %664 = dma.done.wait [#allocation5], 64  }
 0x12a   :  { %665 = vsyncadd [#allocation5], 4294967232 }
 0x12b   :  { %542 = vsyncpa [#allocation3], 1 }
 0x12c   :  { %543 = vsyncpa [#allocation5], 1 }

</bundles_post_ra>
